<compile_context>
chip_gen: v7x
topology: tpu7x:2x2x1
jax: 0.10.0
libtpu: 0.0.40
codegen_flags: <defaults>
</compile_context>

<pallas_src>
import functools

import jax
import jax.numpy as jnp
from jax.experimental import pallas as pl
from jax.experimental.pallas import tpu as pltpu

_LANE = 128
_TR_CAP = 4096  # rows per tile -> 2 MiB f32 logits + 1 MiB bf16 targets per step


def _bce_dice_kernel(x_ref, t_ref, out_ref,
                     bce_acc, inter_acc, in_acc, tgt_acc,
                     *, tr, d_valid, needs_mask):
    j = pl.program_id(1)

    @pl.when(j == 0)
    def _():
        bce_acc[...] = jnp.zeros_like(bce_acc)
        inter_acc[...] = jnp.zeros_like(inter_acc)
        in_acc[...] = jnp.zeros_like(in_acc)
        tgt_acc[...] = jnp.zeros_like(tgt_acc)

    x = x_ref[...].astype(jnp.float32)   # (tr, 128) logits
    t = t_ref[...].astype(jnp.float32)   # (tr, 128) targets (bf16 -> f32)

    # Shared transcendental: e = exp(-|x|) feeds both BCE and sigmoid.
    e = jnp.exp(-jnp.abs(x))
    # Stable BCE-with-logits (matches torch): max(x,0) - x*t + log1p(exp(-|x|))
    bce_el = jnp.maximum(x, 0.0) - x * t + jnp.log1p(e)
    # Stable sigmoid: x>=0 -> 1/(1+e) ; x<0 -> e/(1+e)   (exact divide on purpose)
    s = jnp.where(x >= 0.0, 1.0, e) / (1.0 + e)

    if needs_mask:
        # Zero out contributions from the zero-padded tail (x=0 would otherwise
        # add log(2) to BCE and 0.5 to the sigmoid sum).
        row = jax.lax.broadcasted_iota(jnp.int32, x.shape, 0) + j * tr
        col = jax.lax.broadcasted_iota(jnp.int32, x.shape, 1)
        valid = (row * _LANE + col) < d_valid
        bce_el = jnp.where(valid, bce_el, 0.0)
        s = jnp.where(valid, s, 0.0)

    # Pure VPU lane/sublane-aligned adds; no per-step cross-lane reductions.
    bce_acc[...] += bce_el
    inter_acc[...] += s * t
    in_acc[...] += s
    tgt_acc[...] += t

    @pl.when(j == pl.num_programs(1) - 1)
    def _():
        # One sublane-reduce per statistic per sample; lane reduce + final
        # bce/dice math happen in the wrapper.
        out_ref[0:1, :] = jnp.sum(bce_acc[...], axis=0, keepdims=True)
        out_ref[1:2, :] = jnp.sum(inter_acc[...], axis=0, keepdims=True)
        out_ref[2:3, :] = jnp.sum(in_acc[...], axis=0, keepdims=True)
        out_ref[3:4, :] = jnp.sum(tgt_acc[...], axis=0, keepdims=True)


def bce_dice_loss(logits, target):
    """logits, target: NCHW float arrays. Returns scalar float32 loss."""
    n = logits.shape[0]
    d = 1
    for s in logits.shape[1:]:
        d *= s

    # Row-packed tiling of the flattened feature axis.
    r = -(-d // _LANE)                      # rows of width 128 per sample
    if r <= _TR_CAP:
        tr = r                              # single chunk, full-extent block
        r_pad = r
    else:
        tr = _TR_CAP                        # multiple of 16 (bf16-safe)
        r_pad = -(-r // _TR_CAP) * _TR_CAP
    d_pad = r_pad * _LANE
    needs_mask = d_pad != d
    num_chunks = r_pad // tr

    x = logits.reshape(n, d)
    # 0/1 segmentation masks are exactly representable in bf16 -> ~halves the
    # target's HBM traffic.  (Soft labels would lose precision here.)
    t = target.reshape(n, d).astype(jnp.bfloat16)
    if needs_mask:
        x = jnp.pad(x, ((0, 0), (0, d_pad - d)))
        t = jnp.pad(t, ((0, 0), (0, d_pad - d)))
    x = x.reshape(n, r_pad, _LANE)
    t = t.reshape(n, r_pad, _LANE)

    kernel = functools.partial(_bce_dice_kernel,
                               tr=tr, d_valid=d, needs_mask=needs_mask)

    # VMEM budget: double-buffered input tiles + 4 f32 accumulators + output.
    x_tile = tr * _LANE * x.dtype.itemsize
    t_tile = tr * _LANE * t.dtype.itemsize
    acc_bytes = 4 * tr * _LANE * 4
    vmem_need = 2 * (x_tile + t_tile) + acc_bytes + 2 * 4 * _LANE * 4
    vmem_limit = int(min(32 * 2**20, max(int(vmem_need * 1.5), 8 * 2**20)))

    parts = pl.pallas_call(
        kernel,
        out_shape=jax.ShapeDtypeStruct((n, 4, _LANE), jnp.float32),
        grid_spec=pltpu.PrefetchScalarGridSpec(
            num_scalar_prefetch=0,
            grid=(n, num_chunks),
            in_specs=[
                pl.BlockSpec((None, tr, _LANE), lambda i, j: (i, j, 0)),
                pl.BlockSpec((None, tr, _LANE), lambda i, j: (i, j, 0)),
            ],
            out_specs=pl.BlockSpec((None, 4, _LANE), lambda i, j: (i, 0, 0)),
            scratch_shapes=[
                pltpu.VMEM((tr, _LANE), jnp.float32),  # bce partials
                pltpu.VMEM((tr, _LANE), jnp.float32),  # intersection partials
                pltpu.VMEM((tr, _LANE), jnp.float32),  # sigmoid-sum partials
                pltpu.VMEM((tr, _LANE), jnp.float32),  # target-sum partials
            ],
        ),
        compiler_params=pltpu.CompilerParams(
            dimension_semantics=("parallel", "arbitrary"),
            vmem_limit_bytes=vmem_limit),
    )(x, t)

    # Tiny wrapper-side combine on the lane-dense (n, 4, 128) partials.
    bce_sum = jnp.sum(parts[:, 0, :])
    inter = jnp.sum(parts[:, 1, :], axis=-1)       # (n,)
    sig_sum = jnp.sum(parts[:, 2, :], axis=-1)     # (n,)
    tgt_sum = jnp.sum(parts[:, 3, :], axis=-1)     # (n,)

    smooth = 1e-05
    bce = bce_sum / float(n * d)                   # 'mean' reduction
    dice = (2.0 * inter + smooth) / (sig_sum + tgt_sum + smooth)
    dice_loss = 1.0 - jnp.sum(dice) / float(n)
    return 0.5 * bce + dice_loss


def _reference(logits, target):
    # Pure-JAX reference mirroring the PyTorch forward.
    x = logits.astype(jnp.float32)
    t = target.astype(jnp.float32)
    bce = jnp.mean(jnp.maximum(x, 0.0) - x * t + jnp.log1p(jnp.exp(-jnp.abs(x))))
    smooth = 1e-05
    n = x.shape[0]
    s = jax.nn.sigmoid(x).reshape(n, -1)
    tt = t.reshape(n, -1)
    inter = jnp.sum(s * tt, axis=1)
    dice = (2.0 * inter + smooth) / (jnp.sum(s, axis=1) + jnp.sum(tt, axis=1) + smooth)
    dice_loss = 1.0 - jnp.sum(dice) / n
    return 0.5 * bce + dice_loss


if __name__ == "__main__":
    key = jax.random.PRNGKey(0)
    k1, k2 = jax.random.split(key)
    # NCHW, matching PyTorch segmentation conventions: batch=2, ch=4, 16x16.
    logits = jax.random.normal(k1, (2, 4, 16, 16), dtype=jnp.float32)
    target = (jax.random.uniform(k2, (2, 4, 16, 16)) > 0.5).astype(jnp.float32)

    loss = jax.block_until_ready(bce_dice_loss(logits, target))
    ref = jax.block_until_ready(_reference(logits, target))
    assert jnp.allclose(loss, ref, rtol=1e-5, atol=1e-5), (loss, ref)
    print("KERNEL_OK")
</pallas_src>

<mosaic_0001>
module attributes {stable_mosaic.version = 11 : i64} {
  func.func @_bce_dice_kernel(%arg0: i32, %arg1: i32, %arg2: memref<1x8x128xf32, #tpu.memory_space<vmem>>, %arg3: memref<1x8x128xbf16, #tpu.memory_space<vmem>>, %arg4: memref<1x4x128xf32, #tpu.memory_space<vmem>>, %arg5: memref<8x128xf32, #tpu.memory_space<vmem>>, %arg6: memref<8x128xf32, #tpu.memory_space<vmem>>, %arg7: memref<8x128xf32, #tpu.memory_space<vmem>>, %arg8: memref<8x128xf32, #tpu.memory_space<vmem>>) attributes {dimension_semantics = [#tpu.dimension_semantics<parallel>, #tpu.dimension_semantics<arbitrary>], iteration_bounds = array<i64: 2, 1>, scalar_prefetch = 0 : i64, scratch_operands = 4 : i64, tpu.core_type = #tpu.core_type<tc>, window_params = [{transform_indices = @transform_0, window_bounds = array<i64: 1, 8, 128>}, {transform_indices = @transform_1, window_bounds = array<i64: 1, 8, 128>}, {transform_indices = @transform_2, window_bounds = array<i64: 1, 4, 128>}]} {
    %c0_i32 = arith.constant 0 : i32
    %0 = arith.cmpi eq, %arg1, %c0_i32 : i32
    %1 = arith.extui %0 : i1 to i32
    %c0_i32_0 = arith.constant 0 : i32
    %2 = arith.cmpi ne, %1, %c0_i32_0 : i32
    scf.if %2 {
      %cst_28 = arith.constant 0.000000e+00 : f32
      %41 = vector.broadcast %cst_28 : f32 to vector<8x128xf32>
      %c0_29 = arith.constant 0 : index
      %c0_30 = arith.constant 0 : index
      %42 = vector.load %arg5[%c0_29, %c0_30] : memref<8x128xf32, #tpu.memory_space<vmem>>, vector<8x128xf32>
      tpu.vector_store %arg5[%c0_29, %c0_30], %41 {strides = array<i32>} : memref<8x128xf32, #tpu.memory_space<vmem>>, vector<8x128xf32>,
      %cst_31 = arith.constant 0.000000e+00 : f32
      %43 = vector.broadcast %cst_31 : f32 to vector<8x128xf32>
      %c0_32 = arith.constant 0 : index
      %c0_33 = arith.constant 0 : index
      %44 = vector.load %arg6[%c0_32, %c0_33] : memref<8x128xf32, #tpu.memory_space<vmem>>, vector<8x128xf32>
      tpu.vector_store %arg6[%c0_32, %c0_33], %43 {strides = array<i32>} : memref<8x128xf32, #tpu.memory_space<vmem>>, vector<8x128xf32>,
      %cst_34 = arith.constant 0.000000e+00 : f32
      %45 = vector.broadcast %cst_34 : f32 to vector<8x128xf32>
      %c0_35 = arith.constant 0 : index
      %c0_36 = arith.constant 0 : index
      %46 = vector.load %arg7[%c0_35, %c0_36] : memref<8x128xf32, #tpu.memory_space<vmem>>, vector<8x128xf32>
      tpu.vector_store %arg7[%c0_35, %c0_36], %45 {strides = array<i32>} : memref<8x128xf32, #tpu.memory_space<vmem>>, vector<8x128xf32>,
      %cst_37 = arith.constant 0.000000e+00 : f32
      %47 = vector.broadcast %cst_37 : f32 to vector<8x128xf32>
      %c0_38 = arith.constant 0 : index
      %c0_39 = arith.constant 0 : index
      %48 = vector.load %arg8[%c0_38, %c0_39] : memref<8x128xf32, #tpu.memory_space<vmem>>, vector<8x128xf32>
      tpu.vector_store %arg8[%c0_38, %c0_39], %47 {strides = array<i32>} : memref<8x128xf32, #tpu.memory_space<vmem>>, vector<8x128xf32>,
    } else {
    }
    %c0 = arith.constant 0 : index
    %c0_1 = arith.constant 0 : index
    %c0_2 = arith.constant 0 : index
    %3 = vector.load %arg2[%c0, %c0_1, %c0_2] : memref<1x8x128xf32, #tpu.memory_space<vmem>>, vector<1x8x128xf32>
    %4 = vector.shape_cast %3 : vector<1x8x128xf32> to vector<8x128xf32>
    %c0_3 = arith.constant 0 : index
    %c0_4 = arith.constant 0 : index
    %c0_5 = arith.constant 0 : index
    %5 = vector.load %arg3[%c0_3, %c0_4, %c0_5] : memref<1x8x128xbf16, #tpu.memory_space<vmem>>, vector<1x8x128xbf16>
    %6 = vector.shape_cast %5 : vector<1x8x128xbf16> to vector<8x128xbf16>
    %7 = arith.extf %6 : vector<8x128xbf16> to vector<8x128xf32>
    %8 = math.absf %4 : vector<8x128xf32>
    %cst = arith.constant 0.000000e+00 : f32
    %9 = vector.broadcast %cst : f32 to vector<8x128xf32>
    %10 = arith.subf %9, %8 : vector<8x128xf32>
    %11 = math.exp %10 : vector<8x128xf32>
    %cst_6 = arith.constant 0.000000e+00 : f32
    %12 = vector.broadcast %cst_6 : f32 to vector<8x128xf32>
    %13 = arith.maximumf %4, %12 : vector<8x128xf32>
    %14 = arith.mulf %4, %7 : vector<8x128xf32>
    %15 = arith.subf %13, %14 : vector<8x128xf32>
    %16 = math.log1p %11 : vector<8x128xf32>
    %17 = arith.addf %15, %16 : vector<8x128xf32>
    %cst_7 = arith.constant 0.000000e+00 : f32
    %18 = vector.broadcast %cst_7 : f32 to vector<8x128xf32>
    %19 = arith.cmpf oge, %4, %18 : vector<8x128xf32>
    %cst_8 = arith.constant 1.000000e+00 : f32
    %20 = vector.broadcast %cst_8 : f32 to vector<8x128xf32>
    %21 = arith.select %19, %20, %11 : vector<8x128xi1>, vector<8x128xf32>
    %cst_9 = arith.constant 1.000000e+00 : f32
    %22 = vector.broadcast %cst_9 : f32 to vector<8x128xf32>
    %23 = arith.addf %22, %11 : vector<8x128xf32>
    %24 = arith.divf %21, %23 : vector<8x128xf32>
    %c0_10 = arith.constant 0 : index
    %c0_11 = arith.constant 0 : index
    %25 = vector.load %arg5[%c0_10, %c0_11] : memref<8x128xf32, #tpu.memory_space<vmem>>, vector<8x128xf32>
    %26 = arith.addf %25, %17 : vector<8x128xf32>
    %c0_12 = arith.constant 0 : index
    %c0_13 = arith.constant 0 : index
    %27 = vector.load %arg5[%c0_12, %c0_13] : memref<8x128xf32, #tpu.memory_space<vmem>>, vector<8x128xf32>
    tpu.vector_store %arg5[%c0_12, %c0_13], %26 {strides = array<i32>} : memref<8x128xf32, #tpu.memory_space<vmem>>, vector<8x128xf32>,
    %c0_14 = arith.constant 0 : index
    %c0_15 = arith.constant 0 : index
    %28 = vector.load %arg6[%c0_14, %c0_15] : memref<8x128xf32, #tpu.memory_space<vmem>>, vector<8x128xf32>
    %29 = arith.mulf %24, %7 : vector<8x128xf32>
    %30 = arith.addf %28, %29 : vector<8x128xf32>
    %c0_16 = arith.constant 0 : index
    %c0_17 = arith.constant 0 : index
    %31 = vector.load %arg6[%c0_16, %c0_17] : memref<8x128xf32, #tpu.memory_space<vmem>>, vector<8x128xf32>
    tpu.vector_store %arg6[%c0_16, %c0_17], %30 {strides = array<i32>} : memref<8x128xf32, #tpu.memory_space<vmem>>, vector<8x128xf32>,
    %c0_18 = arith.constant 0 : index
    %c0_19 = arith.constant 0 : index
    %32 = vector.load %arg7[%c0_18, %c0_19] : memref<8x128xf32, #tpu.memory_space<vmem>>, vector<8x128xf32>
    %33 = arith.addf %32, %24 : vector<8x128xf32>
    %c0_20 = arith.constant 0 : index
    %c0_21 = arith.constant 0 : index
    %34 = vector.load %arg7[%c0_20, %c0_21] : memref<8x128xf32, #tpu.memory_space<vmem>>, vector<8x128xf32>
    tpu.vector_store %arg7[%c0_20, %c0_21], %33 {strides = array<i32>} : memref<8x128xf32, #tpu.memory_space<vmem>>, vector<8x128xf32>,
    %c0_22 = arith.constant 0 : index
    %c0_23 = arith.constant 0 : index
    %35 = vector.load %arg8[%c0_22, %c0_23] : memref<8x128xf32, #tpu.memory_space<vmem>>, vector<8x128xf32>
    %36 = arith.addf %35, %7 : vector<8x128xf32>
    %c0_24 = arith.constant 0 : index
    %c0_25 = arith.constant 0 : index
    %37 = vector.load %arg8[%c0_24, %c0_25] : memref<8x128xf32, #tpu.memory_space<vmem>>, vector<8x128xf32>
    tpu.vector_store %arg8[%c0_24, %c0_25], %36 {strides = array<i32>} : memref<8x128xf32, #tpu.memory_space<vmem>>, vector<8x128xf32>,
    %c0_i32_26 = arith.constant 0 : i32
    %38 = arith.cmpi eq, %arg1, %c0_i32_26 : i32
    %39 = arith.extui %38 : i1 to i32
    %c0_i32_27 = arith.constant 0 : i32
    %40 = arith.cmpi ne, %39, %c0_i32_27 : i32
    scf.if %40 {
      %c0_28 = arith.constant 0 : index
      %c0_29 = arith.constant 0 : index
      %41 = vector.load %arg5[%c0_28, %c0_29] : memref<8x128xf32, #tpu.memory_space<vmem>>, vector<8x128xf32>
      %cst_30 = arith.constant dense<0.000000e+00> : vector<128xf32>
      %42 = vector.multi_reduction <add>, %41, %cst_30 [0] : vector<8x128xf32> to vector<128xf32>
      %43 = vector.shape_cast %42 : vector<128xf32> to vector<1x128xf32>
      %c0_31 = arith.constant 0 : index
      %c0_32 = arith.constant 0 : index
      %c0_33 = arith.constant 0 : index
      %44 = vector.load %arg4[%c0_31, %c0_32, %c0_33] : memref<1x4x128xf32, #tpu.memory_space<vmem>>, vector<1x1x128xf32>
      %45 = vector.shape_cast %44 : vector<1x1x128xf32> to vector<1x128xf32>
      %46 = vector.shape_cast %43 : vector<1x128xf32> to vector<1x1x128xf32>
      tpu.vector_store %arg4[%c0_31, %c0_32, %c0_33], %46 {strides = array<i32>} : memref<1x4x128xf32, #tpu.memory_space<vmem>>, vector<1x1x128xf32>,
      %c0_34 = arith.constant 0 : index
      %c0_35 = arith.constant 0 : index
      %47 = vector.load %arg6[%c0_34, %c0_35] : memref<8x128xf32, #tpu.memory_space<vmem>>, vector<8x128xf32>
      %cst_36 = arith.constant dense<0.000000e+00> : vector<128xf32>
      %48 = vector.multi_reduction <add>, %47, %cst_36 [0] : vector<8x128xf32> to vector<128xf32>
      %49 = vector.shape_cast %48 : vector<128xf32> to vector<1x128xf32>
      %c0_37 = arith.constant 0 : index
      %c1 = arith.constant 1 : index
      %c0_38 = arith.constant 0 : index
      %50 = vector.load %arg4[%c0_37, %c1, %c0_38] : memref<1x4x128xf32, #tpu.memory_space<vmem>>, vector<1x1x128xf32>
      %51 = vector.shape_cast %50 : vector<1x1x128xf32> to vector<1x128xf32>
      %52 = vector.shape_cast %49 : vector<1x128xf32> to vector<1x1x128xf32>
      tpu.vector_store %arg4[%c0_37, %c1, %c0_38], %52 {strides = array<i32>} : memref<1x4x128xf32, #tpu.memory_space<vmem>>, vector<1x1x128xf32>,
      %c0_39 = arith.constant 0 : index
      %c0_40 = arith.constant 0 : index
      %53 = vector.load %arg7[%c0_39, %c0_40] : memref<8x128xf32, #tpu.memory_space<vmem>>, vector<8x128xf32>
      %cst_41 = arith.constant dense<0.000000e+00> : vector<128xf32>
      %54 = vector.multi_reduction <add>, %53, %cst_41 [0] : vector<8x128xf32> to vector<128xf32>
      %55 = vector.shape_cast %54 : vector<128xf32> to vector<1x128xf32>
      %c0_42 = arith.constant 0 : index
      %c2 = arith.constant 2 : index
      %c0_43 = arith.constant 0 : index
      %56 = vector.load %arg4[%c0_42, %c2, %c0_43] : memref<1x4x128xf32, #tpu.memory_space<vmem>>, vector<1x1x128xf32>
      %57 = vector.shape_cast %56 : vector<1x1x128xf32> to vector<1x128xf32>
      %58 = vector.shape_cast %55 : vector<1x128xf32> to vector<1x1x128xf32>
      tpu.vector_store %arg4[%c0_42, %c2, %c0_43], %58 {strides = array<i32>} : memref<1x4x128xf32, #tpu.memory_space<vmem>>, vector<1x1x128xf32>,
      %c0_44 = arith.constant 0 : index
      %c0_45 = arith.constant 0 : index
      %59 = vector.load %arg8[%c0_44, %c0_45] : memref<8x128xf32, #tpu.memory_space<vmem>>, vector<8x128xf32>
      %cst_46 = arith.constant dense<0.000000e+00> : vector<128xf32>
      %60 = vector.multi_reduction <add>, %59, %cst_46 [0] : vector<8x128xf32> to vector<128xf32>
      %61 = vector.shape_cast %60 : vector<128xf32> to vector<1x128xf32>
      %c0_47 = arith.constant 0 : index
      %c3 = arith.constant 3 : index
      %c0_48 = arith.constant 0 : index
      %62 = vector.load %arg4[%c0_47, %c3, %c0_48] : memref<1x4x128xf32, #tpu.memory_space<vmem>>, vector<1x1x128xf32>
      %63 = vector.shape_cast %62 : vector<1x1x128xf32> to vector<1x128xf32>
      %64 = vector.shape_cast %61 : vector<1x128xf32> to vector<1x1x128xf32>
      tpu.vector_store %arg4[%c0_47, %c3, %c0_48], %64 {strides = array<i32>} : memref<1x4x128xf32, #tpu.memory_space<vmem>>, vector<1x1x128xf32>,
    } else {
    }
    return
  }
  func.func @transform_0(%arg0: i32, %arg1: i32) -> (i32, i32, i32) {
    %c0_i32 = arith.constant 0 : i32
    %c0_i32_0 = arith.constant 0 : i32
    return %arg0, %arg1, %c0_i32 : i32, i32, i32
  }
  func.func @transform_1(%arg0: i32, %arg1: i32) -> (i32, i32, i32) {
    %c0_i32 = arith.constant 0 : i32
    %c0_i32_0 = arith.constant 0 : i32
    return %arg0, %arg1, %c0_i32 : i32, i32, i32
  }
  func.func @transform_2(%arg0: i32, %arg1: i32) -> (i32, i32, i32) {
    %c0_i32 = arith.constant 0 : i32
    %c0_i32_0 = arith.constant 0 : i32
    %c0_i32_1 = arith.constant 0 : i32
    return %arg0, %c0_i32, %c0_i32_0 : i32, i32, i32
  }
}

</mosaic_0001>

<bundles_post_ra>
// kernel: tpu_custom_call.1
= control target key start
LH: loop header
LB: loop body
LE: loop exit
PB: predicated region body
PF: predicated region fallthrough
CT: control target
= control target key end

     0   :  { %7 = vsyncpa [#allocation7], 0  ;;  %s889_s0 = inlined_call_operand.hbm [shape: f32[2,8,128], index: 0, kind: input, shape index: {}]   ;;  %s890_s1 = inlined_call_operand.hbm [shape: bf16[2,8,128], index: 1, kind: input, shape index: {}]   ;;  %s891_s2 = inlined_call_operand.hbm [shape: f32[2,4,128], index: 2, kind: output, shape index: {}]  }
   0x1   :  { %9 = vsyncpa [#allocation7 + $0x1], 0 }
   0x2   :  { %10 = vsyncpa [#allocation10], 0 }
   0x3   :  { %12 = vsyncpa [#allocation10 + $0x1], 0 }
   0x4   :  { %13 = vsyncpa [#allocation8], 0 }
   0x5   :  { %15 = vsyncpa [#allocation8 + $0x1], 0  ;;  %s667_s9 = smov 0   ;;  %s669_s10 = smov 0  }
   0x6   :  { %s671_s11 = smov 0   ;;  %s673_s12 = smov 0  }
   0x7   :  { %s675_s13 = smov 0   ;;  %s677_s14 = smov 0  }
   0x8 LB: > { %s412_s15 = sadd.s32 4294967295, %s647_s14   ;;  %s413_s16 = sadd.s32 4294967294, %s647_s14   ;;  %s647_s14 = sphi %s677_s14, %s21_s14   ;;  %s643_s13 = sphi %s675_s13, %s911_s13   ;;  %s639_s12 = sphi %s673_s12, %s910_s12   ;;  %s635_s11 = sphi %s671_s11, %s909_s11   ;;  %s631_s10 = sphi %s669_s10, %s908_s10   ;;  %s627_s9 = sphi %s667_s9, %s907_s9  }
   0x9   : > { %s33_s17 = sadd.s32 1, %s643_s13  ;;  %s42_s18 = sadd.s32 1, %s635_s11 }
   0xa   : > { %p35_p0 = scmp.ge.s32.totalorder %s33_s17, 2  ;;  %p49_p1 = scmp.ne.s32.totalorder %s635_s11, %s631_s10 }
   0xb   : > { %p50_p2 = scmp.eq.s32.totalorder %s647_s14, 0  ;;  %p55_p3 = scmp.ne.s32.totalorder %s631_s10, %s627_s9 }
   0xc   : > { %s913_s17 = smov (%p35_p0, %s33_s17), 0  ;;  %p56_p5 = scmp.eq.s32.totalorder %s412_s15, 0 }
   0xd   : > { %p708_p4 = por %p50_p2, %p49_p1  ;;  %s37_s20 = ssub.s32 %s643_s13, %s913_s17 }
   0xe   : > { %p107_p6 = scmp.eq.s32.totalorder %s412_s15, 1  ;;  %p40_p7 = scmp.eq.s32.totalorder %s37_s20, 0 }
   0xf   : > { %p714_p8 = por %p56_p5, %p55_p3  ;;  %p113_p10 = scmp.eq.s32.totalorder %s413_s16, 1 }
  0x10   : > { %p718_p9 = por %p107_p6, %p49_p1  ;;  %p445_p13 = scmp.lt.s32.totalorder %s647_s14, 2 }
  0x11   : > { %s895_s21 = scalar_select %p714_p8, 1, 0 }
  0x12   : > { %s896_s22 = scalar_select %p718_p9, 1, 0 }
  0x13   : > { %s723_s23 = scalar_select %p40_p7, %s635_s11, %s42_s18  }
  0x14   : > { %p725_p11 = por %p113_p10, %p55_p3  ;;  %s732_s25 = sand.u32 1, %s635_s11  }
  0x15   : > { %s416_s26 = sshll.u32 %s732_s25, 3  ;;  %s417_s27 = sshll.u32 %s643_s13, 7 }
  0x16   : > { %s897_s24 = scalar_select %p725_p11, 1, 0 }
  0x17   : > { %s739_s30 = scalar_lea.hbm %s889_s0, %s417_s27  ;;  %s137_s3 = scalar_lea.vmem [#allocation6], %s416_s26 }
  0x18   : > { %s145_s4 = sshll.u32 %s137_s3, 4  ;;  %p745_p0 = pnand %p445_p13, %p708_p4  ;;  %s741_s4 = int_to_ptr.vmem [resolvable:$true] %s145_s4 }
  0x19   : > { %s134_s6 = scalar_lea.sflag [#allocation7], %s732_s25  ;;  %s501_s7 = scalar_lea.hbm %s739_s30, 128 }
  0x1a   : > { %p502_p3 = scmp.ne.s32.totalorder %s739_s30, %s501_s7  ;;  %p503_p5 = pneg %p745_p0 }
  0x1b   : > { %s506_s16 = scalar_lea.hbm %s889_s0, 256  ;;  %p507_p4 = scmp.lt.u32.totalorder %s739_s30, %s889_s0 }
  0x1c   : > { %p504_p6 = pnand %p503_p5, %p502_p3  ;;  %p508_p10 = scmp.lt.u32.totalorder %s506_s16, %s501_s7 }
  0x1d   : > { %p510_p12 = scmp.lt.u32.totalorder %s501_s7, %s739_s30 }
  0x1e   : > { %p505_p7 = pneg %p504_p6  ;;  %p509_p13 = por %p508_p10, %p507_p4 }
  0x20   : > { %p511_p1 = por %p510_p12, %p509_p13 }
  0x22   : > { %p512_p2 = pnand %p511_p1, %p505_p7 }
  0x24   : > { %515 = shalt.err (!%p512_p2)
}
  0x25   : > { %s516_s20 = scalar_lea.vmem %s741_s4, 128  ;;  %s649_s26 = smov [#allocation6]  }
  0x26   : > { %p517_p3 = scmp.ne.s32.totalorder %s741_s4, %s516_s20  ;;  %s521_s27 = sshll.u32 %s649_s26, 4  ;;  %s522_s27 = int_to_ptr.vmem [resolvable:$false] %s521_s27 }
  0x27   : > { %s523_s28 = scalar_lea.vmem %s522_s27, 256  ;;  %p524_p9 = scmp.lt.s32.totalorder %s741_s4, %s522_s27 }
  0x28   : > { %p519_p6 = pnand %p517_p3, %p503_p5  ;;  %p525_p4 = scmp.lt.s32.totalorder %s523_s28, %s516_s20 }
  0x2a   : > { %p520_p11 = pneg %p519_p6  ;;  %p526_p10 = por %p525_p4, %p524_p9 }
  0x2c   : > { %p527_p12 = pnand %p526_p10, %p520_p11 }
  0x2e   : > { %530 = shalt.err (!%p527_p12)
}
  0x2f   : > { %437 = dma.hbm_to_vmem [thread:$0]  (!%p745_p0), %s739_s30, 128, %s741_s4, %s134_s6  }
  0x30   : > { %p899_p1 = scmp.lt.s32.totalorder %s647_s14, 3  ;;  %p900_p2 = scmp.ge.s32.totalorder %s647_s14, 1 }
  0x31   : > { %s418_s3 = sshll.u32 %s732_s25, 2  ;;  %s419_s7 = sshll.u32 %s643_s13, 6 }
  0x32   : > { %p781_p7 = pnand %p900_p2, %p899_p1  ;;  %s790_s16 = scalar_lea.hbm %s890_s1, %s419_s7 }
  0x33   : > { %s156_s18 = scalar_lea.vmem [#allocation9], %s418_s3  ;;  %s153_s30 = scalar_lea.sflag [#allocation10], %s732_s25 }
  0x34   : > { %s901_s29 = scalar_select %p781_p7, 1, 0 }
  0x35   : > { %s164_s19 = sshll.u32 %s156_s18, 4  ;;  %s531_s4 = scalar_lea.hbm %s790_s16, 64  ;;  %s165_s19 = int_to_ptr.vmem [resolvable:$true] %s164_s19 }
  0x36   : > { %p532_p9 = scmp.ne.s32.totalorder %s790_s16, %s531_s4  ;;  %s536_s26 = scalar_lea.hbm %s890_s1, 128 }
  0x37   : > { %p537_p3 = scmp.lt.u32.totalorder %s790_s16, %s890_s1  ;;  %p538_p6 = scmp.lt.u32.totalorder %s536_s26, %s531_s4 }
  0x38   : > { %p534_p11 = pnand %p532_p9, %p503_p5  ;;  %p540_p10 = scmp.lt.u32.totalorder %s531_s4, %s790_s16 }
  0x39   : > { %p539_p4 = por %p538_p6, %p537_p3 }
  0x3a   : > { %p535_p13 = pneg %p534_p11 }
  0x3b   : > { %p541_p12 = por %p540_p10, %p539_p4 }
  0x3d   : > { %p542_p1 = pnand %p541_p12, %p535_p13 }
  0x3f   : > { %545 = shalt.err (!%p542_p1)
}
  0x40   : > { %s546_s25 = scalar_lea.vmem %s165_s19, 64  ;;  %s650_s3 = smov [#allocation9]  }
  0x41   : > { %p547_p2 = scmp.ne.s32.totalorder %s165_s19, %s546_s25  ;;  %s551_s7 = sshll.u32 %s650_s3, 4  ;;  %s552_s7 = int_to_ptr.vmem [resolvable:$false] %s551_s7 }
  0x42   : > { %s553_s8 = scalar_lea.vmem %s552_s7, 128  ;;  %p554_p8 = scmp.lt.s32.totalorder %s165_s19, %s552_s7 }
  0x43   : > { %p549_p9 = pnand %p547_p2, %p503_p5  ;;  %p555_p7 = scmp.lt.s32.totalorder %s553_s8, %s546_s25 }
  0x45   : > { %p550_p11 = pneg %p549_p9  ;;  %p556_p3 = por %p555_p7, %p554_p8 }
  0x47   : > { %p557_p6 = pnand %p556_p3, %p550_p11 }
  0x49   : > { %560 = shalt.err (!%p557_p6)
}
  0x4a   : > { %440 = dma.hbm_to_vmem [thread:$0]  (!%p745_p0), %s790_s16, 64, %s165_s19, %s153_s30  }
  0x4b   : > { %p902_p13 = scmp.ne.s32.totalorder %s901_s29, 0 }
  0x4c   : > { %s815_s15 = sand.u32 (!%p902_p13), 1, %s631_s10   ;;  %p903_p5 = scmp.ne.s32.totalorder (!%p902_p13), %s895_s21, 0 }
  0x4d   : > { %173 = sbr.rel (%p902_p13) target bundleno = 150 (0x96), region = 28  ;;  %s421_s18 = sshll.u32 (!%p902_p13), %s815_s15, 3 }
  0x4e   : > { %s176_s4 = scalar_lea.sflag (!%p902_p13), [#allocation7], %s815_s15  ;;  %s179_s6 = scalar_lea.vmem (!%p902_p13), [#allocation6], %s421_s18 }
  0x54   : > { %614 = dma.done.wait (%p903_p5), %s176_s4, 128  }
  0x55   : > { %616 = vsyncadd (%p903_p5), %s176_s4, 4294967168  ;;  %s422_s5 = sshll.u32 %s815_s15, 2  ;;  %s185_s29 = scalar_lea.sflag [#allocation10], %s815_s15 }
  0x56   : > { %s188_s16 = scalar_lea.vmem [#allocation9], %s422_s5 }
  0x57   : > { %618 = dma.done.wait (%p903_p5), %s185_s29, 64  }
  0x58   : > { %620 = vsyncadd (%p903_p5), %s185_s29, 4294967232  ;;  %v222_v0 = vld [vmem:[%s179_s6] sm:$0xff]  ;;  %v223_v1 = vld [vmem:[%s188_s16] sm:$0xf]  ;;  %s829_s19 = scalar_lea.vmem [#allocation11], %s422_s5  ;;  %s425_s30 = sshll.u32 %s639_s12, 6 }
  0x59   : > { %v224_v2 = vunpack.c.l.bf16 %v223_v1  ;;  %v225_v3 = vand.u32 2147483647, %v222_v0  ;;  %v229_v16 = vmax.f32 %v222_v0, 0.0  ;;  %vm242_vm0 = vcmp.ge.f32.partialorder %v222_v0, 0.0  ;;  %s309_s21 = sshll.u32 %s829_s19, 4  ;;  %s840_s27 = scalar_lea.hbm %s891_s2, %s425_s30  ;;  %s834_s21 = int_to_ptr.vmem [resolvable:$true] %s309_s21 }
  0x5a   : > { %s296_s28 = scalar_lea.sflag [#allocation8], %s815_s15  ;;  %s561_s12 = scalar_lea.vmem %s834_s21, 64 }
  0x5b   : > { %v226_v4 = vsub.f32 0.0, %v225_v3  ;;  %v288_v5 = vrot.slane %v224_v2, 4  ;;  %v230_v17 = vmul.f32 %v224_v2, %v222_v0  ;;  %p562_p8 = scmp.ne.s32.totalorder %s834_s21, %s561_s12  ;;  %p904_p0 = scmp.ne.s32.totalorder %s896_s22, 0 }
  0x5c   : > { %s651_s25 = smov [#allocation11]  }
  0x5d   : > { %v227_v6 = vmul.f32 1.442695, %v226_v4  ;;  %v289_v7 = vadd.f32 %v288_v5, %v224_v2  ;;  %v231_v22 = vsub.f32 %v229_v16, %v230_v17  ;;  %p563_p7 = pnand %p562_p8, %p904_p0  ;;  %s565_s3 = sshll.u32 %s651_s25, 4  ;;  %s566_s3 = int_to_ptr.vmem [resolvable:$false] %s565_s3 }
  0x5e   : > { %s567_s7 = scalar_lea.vmem %s566_s3, 128  ;;  %p568_p10 = scmp.lt.s32.totalorder %s834_s21, %s566_s3 }
  0x5f   : > { %495 = vpow2.f32 %v227_v6  ;;  %v290_v8 = vrot.slane %v289_v7, 2  ;;  %p564_p4 = pneg %p563_p7  ;;  %p569_p12 = scmp.lt.s32.totalorder %s567_s7, %s561_s12 }
  0x61   : > { %v291_v9 = vadd.f32 %v290_v8, %v289_v7  ;;  %p570_p1 = por %p569_p12, %p568_p10 }
  0x63   : > { %v292_v10 = vrot.slane %v291_v9, 1  ;;  %p571_p2 = pnand %p570_p1, %p564_p4 }
  0x65   : > { %v293_v11 = vadd.f32 %v292_v10, %v291_v9 }
  0x67   : > { %294 = vst [vmem:[%s829_s19 + $0x3] sm:$0x1] %v293_v11 }
  0x69   : > { %v496_v12 = vpop.eup %495 }
  0x6a   : > { %v232_v13 = vadd.f32 1.0, %v496_v12  ;;  %v235_v14 = vmul.f32 -0.5, %v496_v12  ;;  %v238_v18 = vand.u32 2147483647, %v496_v12  ;;  %v243_v20 = vsel %vm242_vm0, 1.0, %v496_v12 }
  0x6c   : > { %497 = vlog2.f32 %v232_v13  ;;  %v236_v15 = vadd.f32 1.0, %v235_v14  ;;  %vm239_vm1 = vcmp.lt.f32.partialorder %v238_v18, 0.0004427343 }
  0x6d   : > { %499 = vrcp.f32 %v232_v13 }
  0x6e   : > { %v237_v19 = vmul.f32 %v496_v12, %v236_v15 }
  0x76   : > { %v498_v21 = vpop.eup %497 }
  0x77   : > { %v500_v23 = vpop.eup %499  ;;  %v234_v24 = vmul.f32 0.6931472, %v498_v21 }
  0x78   : > { %v246_v25 = vmul.f32 %v500_v23, %v243_v20 }
  0x79   : > { %v240_v26 = vsel %vm239_vm1, %v237_v19, %v234_v24 }
  0x7a   : > { %v241_v27 = vadd.f32 %v240_v26, %v231_v22  ;;  %v251_v28 = vmul.f32 %v246_v25, %v224_v2  ;;  %v280_v29 = vrot.slane %v246_v25, 4 }
  0x7c   : > { %v264_v30 = vrot.slane %v241_v27, 4  ;;  %v272_v31 = vrot.slane %v251_v28, 4  ;;  %v281_v32 = vadd.f32 %v280_v29, %v246_v25 }
  0x7e   : > { %v265_v33 = vadd.f32 %v264_v30, %v241_v27  ;;  %v273_v34 = vadd.f32 %v272_v31, %v251_v28  ;;  %v282_v35 = vrot.slane %v281_v32, 2 }
  0x80   : > { %v266_v36 = vrot.slane %v265_v33, 2  ;;  %v274_v37 = vrot.slane %v273_v34, 2  ;;  %v283_v38 = vadd.f32 %v282_v35, %v281_v32 }
  0x82   : > { %v267_v39 = vadd.f32 %v266_v36, %v265_v33  ;;  %v275_v40 = vadd.f32 %v274_v37, %v273_v34  ;;  %v284_v41 = vrot.slane %v283_v38, 1 }
  0x84   : > { %v268_v42 = vrot.slane %v267_v39, 1  ;;  %v276_v43 = vrot.slane %v275_v40, 1  ;;  %v285_v44 = vadd.f32 %v284_v41, %v283_v38 }
  0x86   : > { %v269_v45 = vadd.f32 %v268_v42, %v267_v39  ;;  %v277_v46 = vadd.f32 %v276_v43, %v275_v40  ;;  %286 = vst [vmem:[%s829_s19 + $0x2] sm:$0x1] %v285_v44 }
  0x88   : > { %270 = vst [vmem:[%s829_s19] sm:$0x1] %v269_v45  ;;  %278 = vst [vmem:[%s829_s19 + $0x1] sm:$0x1] %v277_v46 }
  0x89   : > { %574 = shalt.err (!%p571_p2)
}
  0x8a   : > { %s575_s8 = scalar_lea.hbm %s840_s27, 64  ;;  %s579_s4 = scalar_lea.hbm %s891_s2, 128 }
  0x8b   : > { %p576_p9 = scmp.ne.s32.totalorder %s840_s27, %s575_s8  ;;  %p580_p6 = scmp.lt.u32.totalorder %s840_s27, %s891_s2 }
  0x8c   : > { %p581_p13 = scmp.lt.u32.totalorder %s579_s4, %s575_s8  ;;  %p583_p8 = scmp.lt.u32.totalorder %s575_s8, %s840_s27 }
  0x8d   : > { %p577_p11 = pnand %p576_p9, %p904_p0 }
  0x8e   : > { %p582_p5 = por %p581_p13, %p580_p6 }
  0x8f   : > { %p578_p3 = pneg %p577_p11 }
  0x90   : > { %p584_p7 = por %p583_p8, %p582_p5 }
  0x92   : > { %p585_p4 = pnand %p584_p7, %p578_p3 }
  0x94   : > { %588 = shalt.err (!%p585_p4)
}
  0x95   : > { %432 = dma.vmem_to_hbm [thread:$0]  (%p904_p0), %s834_s21, 64, %s840_s27, %s296_s28  }
  0x96 PF: > { %s321_s29 = sand.u32 1, %s627_s9   ;;  %p905_p10 = scmp.ne.s32.totalorder %s897_s24, 0 }
  0x97   : > { %p906_p12 = scmp.ge.s32.totalorder %s647_s14, 2  ;;  %s322_s16 = scalar_lea.sflag [#allocation8], %s321_s29 }
  0x99   : > { %p442_p1 = pnand %p906_p12, %p905_p10 }
  0x9b   : > { %622 = dma.done.wait (!%p442_p1), %s322_s16, 64  }
  0x9c   : > { %624 = vsyncadd (!%p442_p1), %s322_s16, 4294967232  ;;  %s21_s14 = sadd.s32 1, %s647_s14   ;;  %s907_s9 = smov %s631_s10 }
  0x9d   : > { %p18_p2 = scmp.ge.s32.totalorder %s21_s14, 4   ;;  %s908_s10 = smov %s635_s11 }
  0x9e   : > { %s909_s11 = smov %s723_s23  ;;  %s910_s12 = smov %s643_s13 }
  0x9f   : > { %s911_s13 = smov %s913_s17  ;;  %20 = sbr.rel (!%p18_p2) target bundleno = 8 (0x8), region = 94 }
  0xa6   :  { %327 = vsyncpa [#allocation7], 1 }
  0xa7   :  { %329 = vsyncpa [#allocation7 + $0x1], 1 }
  0xa8   :  { %330 = vsyncpa [#allocation10], 1 }
  0xa9   :  { %332 = vsyncpa [#allocation10 + $0x1], 1 }
  0xaa   :  { %333 = vsyncpa [#allocation8], 1 }
  0xab   :  { %335 = vsyncpa [#allocation8 + $0x1], 1 }

</bundles_post_ra>
